<compile_context>
chip_gen: v7x
topology: tpu7x:2x2x1
jax: 0.10.0
libtpu: 0.0.40
codegen_flags: <defaults>
</compile_context>

<pallas_src>
import functools
import math

import jax
import jax.numpy as jnp
import numpy as np
from jax.experimental import pallas as pl
from jax.experimental.pallas import tpu as pltpu


def _bin_conv_kernel(x_ref, w_ref, o_ref, *, taps, tm, depthwise):
    # x_ref: (1, 1, 1, C_in_g, TIN)      bf16  column tile (+ tap halo) of the
    #                                          flattened binarized padded image
    # w_ref: (1, n_taps, C_out_g, C_in_g) bf16 binarized weights for one group
    # o_ref: (1, 1, C_out_g, TM)          f32  dense-output column tile
    c_out_g = o_ref.shape[2]
    acc = jnp.zeros((c_out_g, tm), jnp.float32)
    for t, off in enumerate(taps):            # static unroll over KH*KW taps
        xs = x_ref[0, 0, 0, :, off:off + tm]                  # (C_in_g, TM)
        if depthwise:
            # C_in_g == C_out_g == 1: plain VPU multiply-accumulate.
            acc = acc + (w_ref[0, t].astype(jnp.float32)
                         * xs.astype(jnp.float32))
        else:
            acc = acc + jnp.dot(w_ref[0, t], xs,
                                preferred_element_type=jnp.float32)
    o_ref[0, 0, :, :] = acc.astype(o_ref.dtype)


@functools.partial(jax.jit,
                   static_argnames=("stride", "padding", "dilation", "groups"))
def binary_conv2d(x_nchw, weight_oihw, *, stride=1, padding=0,
                  dilation=(1, 1), groups=1):
    """Forward pass of the binarized Conv module.

    x_nchw:      (N, C_in, H, W) float32
    weight_oihw: (C_out, C_in // groups, KH, KW) float32
    returns:     (N, C_out, H_out, W_out) float32
    """
    if isinstance(stride, int):
        stride = (stride, stride)
    if isinstance(padding, int):
        padding = (padding, padding)
    if isinstance(dilation, int):
        dilation = (dilation, dilation)
    sh, sw = stride
    ph, pw = padding
    dh, dw = dilation

    N, C_in, H, W = x_nchw.shape
    C_out, C_in_g, KH, KW = weight_oihw.shape
    assert C_in == C_in_g * groups and C_out % groups == 0
    C_out_g = C_out // groups

    H_pad, W_pad = H + 2 * ph, W + 2 * pw
    H_dense = H_pad - dh * (KH - 1)          # stride-1 (dense) output extent
    W_dense = W_pad - dw * (KW - 1)
    H_out = (H_dense - 1) // sh + 1
    W_out = (W_dense - 1) // sw + 1

    L = H_pad * W_pad                        # flattened padded plane length
    Q_full = H_dense * W_pad                 # dense output columns computed
    max_off = dh * (KH - 1) * W_pad + dw * (KW - 1)   # largest tap offset

    # Lane-dense column tile (multiple of 128, up to 1024).
    TM = 1024 if Q_full >= 1024 else 128 * math.ceil(Q_full / 128)
    n_tiles = math.ceil(Q_full / TM)
    Q_pad = n_tiles * TM
    TIN = 128 * math.ceil((TM + max_off) / 128)       # tile + tap halo
    L_need = (n_tiles - 1) * TM + TIN

    # ---- wrapper-side prep (pure XLA, 1x traffic) ----
    # Binarize BEFORE zero-padding so the border stays 0 (matches F.conv2d
    # padding of the binarized input).  +-1 is exact in bf16.
    xb = jnp.where(x_nchw > 0, 1.0, -1.0).astype(jnp.bfloat16)
    xb = jnp.pad(xb, ((0, 0), (0, 0), (ph, ph), (pw, pw)))
    xf = xb.reshape(N, groups, C_in_g, L)
    xf = jnp.pad(xf, ((0, 0), (0, 0), (0, 0), (0, L_need - L)))
    # Overlapping column tiles (+halo) -> all in-kernel slice starts static.
    x_tiles = jnp.stack([xf[:, :, :, m * TM: m * TM + TIN]
                         for m in range(n_tiles)], axis=2)
    # x_tiles: (N, groups, n_tiles, C_in_g, TIN)

    # Binarized weights laid out per tap: (groups, KH*KW, C_out_g, C_in_g).
    wb = jnp.where(weight_oihw > 0, 1.0, -1.0).astype(jnp.bfloat16)
    wb = wb.reshape(groups, C_out_g, C_in_g, KH, KW)
    wb = wb.transpose(0, 3, 4, 1, 2).reshape(groups, KH * KW, C_out_g, C_in_g)

    taps = tuple(kh * dh * W_pad + kw * dw
                 for kh in range(KH) for kw in range(KW))
    depthwise = (C_in_g == 1 and C_out_g == 1)

    kernel = functools.partial(_bin_conv_kernel, taps=taps, tm=TM,
                               depthwise=depthwise)

    x_blk = C_in_g * TIN * 2
    w_blk = len(taps) * C_out_g * C_in_g * 2
    o_blk = C_out_g * TM * 4
    vmem_limit = int(min(64 * 2**20,
                         max(32 * 2**20,
                             3 * (x_blk + w_blk + o_blk) + (2 << 20))))

    flops = 2 * N * groups * C_out_g * C_in_g * len(taps) * Q_pad
    bytes_accessed = (x_tiles.size * 2 + wb.size * 2
                      + N * groups * C_out_g * Q_pad * 4)

    out_big = pl.pallas_call(
        kernel,
        out_shape=jax.ShapeDtypeStruct((N, groups, C_out_g, Q_pad),
                                       jnp.float32),
        grid_spec=pltpu.PrefetchScalarGridSpec(
            num_scalar_prefetch=0,
            grid=(N, groups, n_tiles),
            in_specs=[
                pl.BlockSpec((1, 1, 1, C_in_g, TIN),
                             lambda n, g, m: (n, g, m, 0, 0)),
                pl.BlockSpec((1, KH * KW, C_out_g, C_in_g),
                             lambda n, g, m: (g, 0, 0, 0)),
            ],
            out_specs=pl.BlockSpec((1, 1, C_out_g, TM),
                                   lambda n, g, m: (n, g, 0, m)),
        ),
        compiler_params=pltpu.CompilerParams(
            dimension_semantics=("parallel", "parallel", "arbitrary"),
            vmem_limit_bytes=vmem_limit),
        cost_estimate=pl.CostEstimate(flops=flops, transcendentals=0,
                                      bytes_accessed=bytes_accessed),
    )(x_tiles, wb)

    # Dense stride-1 result on the padded grid -> crop / subsample to the
    # true output grid.  Already channel-major (NCHW), no transpose needed.
    dense = out_big[:, :, :, :Q_full].reshape(N, C_out, H_dense, W_pad)
    out = dense[:, :, ::sh, ::sw][:, :, :H_out, :W_out]
    return out


def _reference(x_nchw, weight_oihw, stride, padding, dilation, groups):
    xb = jnp.where(x_nchw > 0, 1.0, -1.0)
    wb = jnp.where(weight_oihw > 0, 1.0, -1.0)
    return jax.lax.conv_general_dilated(
        xb, wb,
        window_strides=stride,
        padding=[(padding[0], padding[0]), (padding[1], padding[1])],
        rhs_dilation=dilation,
        feature_group_count=groups,
        dimension_numbers=("NCHW", "OIHW", "NCHW"))


if __name__ == "__main__":
    def check(N, C_in, H, W, C_out, k, stride, padding, dilation, groups, key):
        kx, kw = jax.random.split(key)
        x = jax.random.normal(kx, (N, C_in, H, W), dtype=jnp.float32)
        w = jax.random.normal(kw, (C_out, C_in // groups, k, k),
                              dtype=jnp.float32)
        out = binary_conv2d(x, w, stride=stride, padding=padding,
                            dilation=dilation, groups=groups)
        out = jax.block_until_ready(out)
        ref = _reference(x, w, stride, padding, dilation, groups)
        np.testing.assert_allclose(np.asarray(out), np.asarray(ref),
                                   rtol=1e-5, atol=1e-5)

    k0, k1, k2 = jax.random.split(jax.random.PRNGKey(0), 3)
    # Primary config of the module under test:
    #   Conv(in=4, out=8, kernel=3, stride=1, padding=1, dilation=(1,1),
    #        groups=1, bias=False), x = (2, 4, 16, 16).
    check(2, 4, 16, 16, 8, 3, (1, 1), (1, 1), (1, 1), 1, k0)
    # Depthwise conv -> exercises the groups grid axis + VPU path.
    check(2, 8, 8, 8, 8, 3, (1, 1), (1, 1), (1, 1), 8, k1)
    # Strided + dilated conv -> dense compute + wrapper subsample path.
    check(1, 4, 16, 16, 8, 3, (2, 2), (2, 2), (2, 2), 1, k2)
    print("KERNEL_OK")
</pallas_src>

<mosaic_0001>
module attributes {stable_mosaic.version = 11 : i64} {
  func.func @_bin_conv_kernel(%arg0: i32, %arg1: i32, %arg2: i32, %arg3: memref<1x1x1x4x512xbf16, #tpu.memory_space<vmem>>, %arg4: memref<1x9x8x4xbf16, #tpu.memory_space<vmem>>, %arg5: memref<1x1x8x384xf32, #tpu.memory_space<vmem>>) attributes {dimension_semantics = [#tpu.dimension_semantics<parallel>, #tpu.dimension_semantics<parallel>, #tpu.dimension_semantics<arbitrary>], iteration_bounds = array<i64: 2, 1, 1>, scalar_prefetch = 0 : i64, scratch_operands = 0 : i64, tpu.core_type = #tpu.core_type<tc>, window_params = [{transform_indices = @transform_0, window_bounds = array<i64: 1, 1, 1, 4, 512>}, {transform_indices = @transform_1, window_bounds = array<i64: 1, 9, 8, 4>}, {transform_indices = @transform_2, window_bounds = array<i64: 1, 1, 8, 384>}]} {
    %cst = arith.constant 0.000000e+00 : f32
    %0 = vector.broadcast %cst : f32 to vector<8x384xf32>
    %c0 = arith.constant 0 : index
    %c0_0 = arith.constant 0 : index
    %c0_1 = arith.constant 0 : index
    %c0_2 = arith.constant 0 : index
    %c0_3 = arith.constant 0 : index
    %1 = vector.load %arg3[%c0, %c0_0, %c0_1, %c0_2, %c0_3] : memref<1x1x1x4x512xbf16, #tpu.memory_space<vmem>>, vector<1x1x1x4x384xbf16>
    %2 = vector.shape_cast %1 : vector<1x1x1x4x384xbf16> to vector<4x384xbf16>
    %c0_4 = arith.constant 0 : index
    %c0_5 = arith.constant 0 : index
    %c0_6 = arith.constant 0 : index
    %c0_7 = arith.constant 0 : index
    %3 = vector.load %arg4[%c0_4, %c0_5, %c0_6, %c0_7] : memref<1x9x8x4xbf16, #tpu.memory_space<vmem>>, vector<1x1x8x4xbf16>
    %4 = vector.shape_cast %3 : vector<1x1x8x4xbf16> to vector<8x4xbf16>
    %cst_8 = arith.constant dense<0.000000e+00> : vector<8x384xf32>
    %5 = tpu.matmul %4, %2, %cst_8 {dimension_numbers = #tpu.dot_dimension_numbers<[1], [0], [0], [1], [0, 0, 1, 1], [], []>} : vector<8x4xbf16>, vector<4x384xbf16>, vector<8x384xf32> -> vector<8x384xf32>
    %6 = arith.addf %0, %5 : vector<8x384xf32>
    %c0_9 = arith.constant 0 : index
    %c0_10 = arith.constant 0 : index
    %c0_11 = arith.constant 0 : index
    %c0_12 = arith.constant 0 : index
    %c1 = arith.constant 1 : index
    %7 = vector.load %arg3[%c0_9, %c0_10, %c0_11, %c0_12, %c1] : memref<1x1x1x4x512xbf16, #tpu.memory_space<vmem>>, vector<1x1x1x4x384xbf16>
    %8 = vector.shape_cast %7 : vector<1x1x1x4x384xbf16> to vector<4x384xbf16>
    %c0_13 = arith.constant 0 : index
    %c1_14 = arith.constant 1 : index
    %c0_15 = arith.constant 0 : index
    %c0_16 = arith.constant 0 : index
    %9 = vector.load %arg4[%c0_13, %c1_14, %c0_15, %c0_16] : memref<1x9x8x4xbf16, #tpu.memory_space<vmem>>, vector<1x1x8x4xbf16>
    %10 = vector.shape_cast %9 : vector<1x1x8x4xbf16> to vector<8x4xbf16>
    %cst_17 = arith.constant dense<0.000000e+00> : vector<8x384xf32>
    %11 = tpu.matmul %10, %8, %cst_17 {dimension_numbers = #tpu.dot_dimension_numbers<[1], [0], [0], [1], [0, 0, 1, 1], [], []>} : vector<8x4xbf16>, vector<4x384xbf16>, vector<8x384xf32> -> vector<8x384xf32>
    %12 = arith.addf %6, %11 : vector<8x384xf32>
    %c0_18 = arith.constant 0 : index
    %c0_19 = arith.constant 0 : index
    %c0_20 = arith.constant 0 : index
    %c0_21 = arith.constant 0 : index
    %c2 = arith.constant 2 : index
    %13 = vector.load %arg3[%c0_18, %c0_19, %c0_20, %c0_21, %c2] : memref<1x1x1x4x512xbf16, #tpu.memory_space<vmem>>, vector<1x1x1x4x384xbf16>
    %14 = vector.shape_cast %13 : vector<1x1x1x4x384xbf16> to vector<4x384xbf16>
    %c0_22 = arith.constant 0 : index
    %c2_23 = arith.constant 2 : index
    %c0_24 = arith.constant 0 : index
    %c0_25 = arith.constant 0 : index
    %15 = vector.load %arg4[%c0_22, %c2_23, %c0_24, %c0_25] : memref<1x9x8x4xbf16, #tpu.memory_space<vmem>>, vector<1x1x8x4xbf16>
    %16 = vector.shape_cast %15 : vector<1x1x8x4xbf16> to vector<8x4xbf16>
    %cst_26 = arith.constant dense<0.000000e+00> : vector<8x384xf32>
    %17 = tpu.matmul %16, %14, %cst_26 {dimension_numbers = #tpu.dot_dimension_numbers<[1], [0], [0], [1], [0, 0, 1, 1], [], []>} : vector<8x4xbf16>, vector<4x384xbf16>, vector<8x384xf32> -> vector<8x384xf32>
    %18 = arith.addf %12, %17 : vector<8x384xf32>
    %c0_27 = arith.constant 0 : index
    %c0_28 = arith.constant 0 : index
    %c0_29 = arith.constant 0 : index
    %c0_30 = arith.constant 0 : index
    %c18 = arith.constant 18 : index
    %19 = vector.load %arg3[%c0_27, %c0_28, %c0_29, %c0_30, %c18] : memref<1x1x1x4x512xbf16, #tpu.memory_space<vmem>>, vector<1x1x1x4x384xbf16>
    %20 = vector.shape_cast %19 : vector<1x1x1x4x384xbf16> to vector<4x384xbf16>
    %c0_31 = arith.constant 0 : index
    %c3 = arith.constant 3 : index
    %c0_32 = arith.constant 0 : index
    %c0_33 = arith.constant 0 : index
    %21 = vector.load %arg4[%c0_31, %c3, %c0_32, %c0_33] : memref<1x9x8x4xbf16, #tpu.memory_space<vmem>>, vector<1x1x8x4xbf16>
    %22 = vector.shape_cast %21 : vector<1x1x8x4xbf16> to vector<8x4xbf16>
    %cst_34 = arith.constant dense<0.000000e+00> : vector<8x384xf32>
    %23 = tpu.matmul %22, %20, %cst_34 {dimension_numbers = #tpu.dot_dimension_numbers<[1], [0], [0], [1], [0, 0, 1, 1], [], []>} : vector<8x4xbf16>, vector<4x384xbf16>, vector<8x384xf32> -> vector<8x384xf32>
    %24 = arith.addf %18, %23 : vector<8x384xf32>
    %c0_35 = arith.constant 0 : index
    %c0_36 = arith.constant 0 : index
    %c0_37 = arith.constant 0 : index
    %c0_38 = arith.constant 0 : index
    %c19 = arith.constant 19 : index
    %25 = vector.load %arg3[%c0_35, %c0_36, %c0_37, %c0_38, %c19] : memref<1x1x1x4x512xbf16, #tpu.memory_space<vmem>>, vector<1x1x1x4x384xbf16>
    %26 = vector.shape_cast %25 : vector<1x1x1x4x384xbf16> to vector<4x384xbf16>
    %c0_39 = arith.constant 0 : index
    %c4 = arith.constant 4 : index
    %c0_40 = arith.constant 0 : index
    %c0_41 = arith.constant 0 : index
    %27 = vector.load %arg4[%c0_39, %c4, %c0_40, %c0_41] : memref<1x9x8x4xbf16, #tpu.memory_space<vmem>>, vector<1x1x8x4xbf16>
    %28 = vector.shape_cast %27 : vector<1x1x8x4xbf16> to vector<8x4xbf16>
    %cst_42 = arith.constant dense<0.000000e+00> : vector<8x384xf32>
    %29 = tpu.matmul %28, %26, %cst_42 {dimension_numbers = #tpu.dot_dimension_numbers<[1], [0], [0], [1], [0, 0, 1, 1], [], []>} : vector<8x4xbf16>, vector<4x384xbf16>, vector<8x384xf32> -> vector<8x384xf32>
    %30 = arith.addf %24, %29 : vector<8x384xf32>
    %c0_43 = arith.constant 0 : index
    %c0_44 = arith.constant 0 : index
    %c0_45 = arith.constant 0 : index
    %c0_46 = arith.constant 0 : index
    %c20 = arith.constant 20 : index
    %31 = vector.load %arg3[%c0_43, %c0_44, %c0_45, %c0_46, %c20] : memref<1x1x1x4x512xbf16, #tpu.memory_space<vmem>>, vector<1x1x1x4x384xbf16>
    %32 = vector.shape_cast %31 : vector<1x1x1x4x384xbf16> to vector<4x384xbf16>
    %c0_47 = arith.constant 0 : index
    %c5 = arith.constant 5 : index
    %c0_48 = arith.constant 0 : index
    %c0_49 = arith.constant 0 : index
    %33 = vector.load %arg4[%c0_47, %c5, %c0_48, %c0_49] : memref<1x9x8x4xbf16, #tpu.memory_space<vmem>>, vector<1x1x8x4xbf16>
    %34 = vector.shape_cast %33 : vector<1x1x8x4xbf16> to vector<8x4xbf16>
    %cst_50 = arith.constant dense<0.000000e+00> : vector<8x384xf32>
    %35 = tpu.matmul %34, %32, %cst_50 {dimension_numbers = #tpu.dot_dimension_numbers<[1], [0], [0], [1], [0, 0, 1, 1], [], []>} : vector<8x4xbf16>, vector<4x384xbf16>, vector<8x384xf32> -> vector<8x384xf32>
    %36 = arith.addf %30, %35 : vector<8x384xf32>
    %c0_51 = arith.constant 0 : index
    %c0_52 = arith.constant 0 : index
    %c0_53 = arith.constant 0 : index
    %c0_54 = arith.constant 0 : index
    %c36 = arith.constant 36 : index
    %37 = vector.load %arg3[%c0_51, %c0_52, %c0_53, %c0_54, %c36] : memref<1x1x1x4x512xbf16, #tpu.memory_space<vmem>>, vector<1x1x1x4x384xbf16>
    %38 = vector.shape_cast %37 : vector<1x1x1x4x384xbf16> to vector<4x384xbf16>
    %c0_55 = arith.constant 0 : index
    %c6 = arith.constant 6 : index
    %c0_56 = arith.constant 0 : index
    %c0_57 = arith.constant 0 : index
    %39 = vector.load %arg4[%c0_55, %c6, %c0_56, %c0_57] : memref<1x9x8x4xbf16, #tpu.memory_space<vmem>>, vector<1x1x8x4xbf16>
    %40 = vector.shape_cast %39 : vector<1x1x8x4xbf16> to vector<8x4xbf16>
    %cst_58 = arith.constant dense<0.000000e+00> : vector<8x384xf32>
    %41 = tpu.matmul %40, %38, %cst_58 {dimension_numbers = #tpu.dot_dimension_numbers<[1], [0], [0], [1], [0, 0, 1, 1], [], []>} : vector<8x4xbf16>, vector<4x384xbf16>, vector<8x384xf32> -> vector<8x384xf32>
    %42 = arith.addf %36, %41 : vector<8x384xf32>
    %c0_59 = arith.constant 0 : index
    %c0_60 = arith.constant 0 : index
    %c0_61 = arith.constant 0 : index
    %c0_62 = arith.constant 0 : index
    %c37 = arith.constant 37 : index
    %43 = vector.load %arg3[%c0_59, %c0_60, %c0_61, %c0_62, %c37] : memref<1x1x1x4x512xbf16, #tpu.memory_space<vmem>>, vector<1x1x1x4x384xbf16>
    %44 = vector.shape_cast %43 : vector<1x1x1x4x384xbf16> to vector<4x384xbf16>
    %c0_63 = arith.constant 0 : index
    %c7 = arith.constant 7 : index
    %c0_64 = arith.constant 0 : index
    %c0_65 = arith.constant 0 : index
    %45 = vector.load %arg4[%c0_63, %c7, %c0_64, %c0_65] : memref<1x9x8x4xbf16, #tpu.memory_space<vmem>>, vector<1x1x8x4xbf16>
    %46 = vector.shape_cast %45 : vector<1x1x8x4xbf16> to vector<8x4xbf16>
    %cst_66 = arith.constant dense<0.000000e+00> : vector<8x384xf32>
    %47 = tpu.matmul %46, %44, %cst_66 {dimension_numbers = #tpu.dot_dimension_numbers<[1], [0], [0], [1], [0, 0, 1, 1], [], []>} : vector<8x4xbf16>, vector<4x384xbf16>, vector<8x384xf32> -> vector<8x384xf32>
    %48 = arith.addf %42, %47 : vector<8x384xf32>
    %c0_67 = arith.constant 0 : index
    %c0_68 = arith.constant 0 : index
    %c0_69 = arith.constant 0 : index
    %c0_70 = arith.constant 0 : index
    %c38 = arith.constant 38 : index
    %49 = vector.load %arg3[%c0_67, %c0_68, %c0_69, %c0_70, %c38] : memref<1x1x1x4x512xbf16, #tpu.memory_space<vmem>>, vector<1x1x1x4x384xbf16>
    %50 = vector.shape_cast %49 : vector<1x1x1x4x384xbf16> to vector<4x384xbf16>
    %c0_71 = arith.constant 0 : index
    %c8 = arith.constant 8 : index
    %c0_72 = arith.constant 0 : index
    %c0_73 = arith.constant 0 : index
    %51 = vector.load %arg4[%c0_71, %c8, %c0_72, %c0_73] : memref<1x9x8x4xbf16, #tpu.memory_space<vmem>>, vector<1x1x8x4xbf16>
    %52 = vector.shape_cast %51 : vector<1x1x8x4xbf16> to vector<8x4xbf16>
    %cst_74 = arith.constant dense<0.000000e+00> : vector<8x384xf32>
    %53 = tpu.matmul %52, %50, %cst_74 {dimension_numbers = #tpu.dot_dimension_numbers<[1], [0], [0], [1], [0, 0, 1, 1], [], []>} : vector<8x4xbf16>, vector<4x384xbf16>, vector<8x384xf32> -> vector<8x384xf32>
    %54 = arith.addf %48, %53 : vector<8x384xf32>
    %c0_75 = arith.constant 0 : index
    %c0_76 = arith.constant 0 : index
    %c0_77 = arith.constant 0 : index
    %c0_78 = arith.constant 0 : index
    %55 = vector.load %arg5[%c0_75, %c0_76, %c0_77, %c0_78] : memref<1x1x8x384xf32, #tpu.memory_space<vmem>>, vector<1x1x8x384xf32>
    %56 = vector.shape_cast %55 : vector<1x1x8x384xf32> to vector<8x384xf32>
    %57 = vector.shape_cast %54 : vector<8x384xf32> to vector<1x1x8x384xf32>
    tpu.vector_store %arg5[%c0_75, %c0_76, %c0_77, %c0_78], %57 {strides = array<i32>} : memref<1x1x8x384xf32, #tpu.memory_space<vmem>>, vector<1x1x8x384xf32>,
    return
  }
  func.func @transform_0(%arg0: i32, %arg1: i32, %arg2: i32) -> (i32, i32, i32, i32, i32) {
    %c0_i32 = arith.constant 0 : i32
    %c0_i32_0 = arith.constant 0 : i32
    %c0_i32_1 = arith.constant 0 : i32
    return %arg0, %arg1, %arg2, %c0_i32, %c0_i32_0 : i32, i32, i32, i32, i32
  }
  func.func @transform_1(%arg0: i32, %arg1: i32, %arg2: i32) -> (i32, i32, i32, i32) {
    %c0_i32 = arith.constant 0 : i32
    %c0_i32_0 = arith.constant 0 : i32
    %c0_i32_1 = arith.constant 0 : i32
    %c0_i32_2 = arith.constant 0 : i32
    return %arg1, %c0_i32, %c0_i32_0, %c0_i32_1 : i32, i32, i32, i32
  }
  func.func @transform_2(%arg0: i32, %arg1: i32, %arg2: i32) -> (i32, i32, i32, i32) {
    %c0_i32 = arith.constant 0 : i32
    %c0_i32_0 = arith.constant 0 : i32
    return %arg0, %arg1, %c0_i32, %arg2 : i32, i32, i32, i32
  }
}

</mosaic_0001>

<bundles_post_ra>
// kernel: binary_conv2d.1
= control target key start
LH: loop header
LB: loop body
LE: loop exit
PB: predicated region body
PF: predicated region fallthrough
CT: control target
= control target key end

     0   :  { %s1782_s9 = smov 0   ;;  %s1784_s10 = smov 0   ;;  %s1953_s0 = inlined_call_operand.vmem [shape: bf16[2,1,1,4,512], index: 0, kind: input, shape index: {}]   ;;  %s1954_s1 = inlined_call_operand.vmem [shape: bf16[1,9,8,4], index: 1, kind: input, shape index: {}]   ;;  %s1955_s2 = inlined_call_operand.vmem [shape: f32[2,1,8,384], index: 2, kind: output, shape index: {}]  }
   0x1   :  { %s1786_s11 = smov 0  }
   0x2 LB: > { %s31_s12 = sadd.s32 1, %s1749_s10  ;;  %p1514_p0 = scmp.ge.s32.totalorder %s1753_s11, 1  ;;  %s1753_s11 = sphi %s1786_s11, %s12_s11   ;;  %s1749_s10 = sphi %s1784_s10, %s1957_s10   ;;  %s1745_s9 = sphi %s1782_s9, %s1956_s9  }
   0x3   : > { %p33_p1 = scmp.ge.s32.totalorder %s31_s12, 2  ;;  %p157_p2 = scmp.lt.s32.totalorder %s1753_s11, 3 }
   0x5   : > { %s1959_s12 = smov (%p33_p1, %s31_s12), 0  ;;  %p158_p3 = pnand %p1514_p0, %p157_p2 }
   0x6   : > { %p200_p4 = scmp.lt.s32.totalorder (!%p158_p3), %s1745_s9, 1  ;;  %v243_v0 = vlaneseq (!%p158_p3)  ;;  %v1755_v1 = vmov (!%p158_p3), 1983009808   ;;  %v1756_v5 = vmov (!%p158_p3), 0.0   ;;  %v1757_v6 = vmov (!%p158_p3), 0   ;;  %s1759_s17 = smov (!%p158_p3), 127  }
   0x7   : > { %161 = sbr.rel (%p158_p3) target bundleno = 457 (0x1c9), region = 28  ;;  %v241_v2 = vunpack.c.l.s4 (!%p158_p3), %v1755_v1  ;;  %1574 = vmatprep.subr.bf16.mxu1 (!%p158_p3), %v1756_v5  ;;  %314 = vmatprep.mubr.bf16.mxu0 (!%p158_p3), %v1757_v6  ;;  %vm1758_vm0 = vmmov (!%p158_p3), 0   ;;  %s1760_s18 = smov (!%p158_p3), 126   ;;  %vm264_vm1 = vcmask (!%p158_p3), 1039360   ;;  %vm272_vm2 = vcmask (!%p158_p3), 1041408  }
   0x8   : > { %v244_v3 = vshrl.u32 (!%p158_p3), %v243_v0, 7  ;;  %1576 = vmatprep.mubr.msk.bf16.mxu1 (!%p158_p3), %vm1758_vm0, %v1756_v5  ;;  %s1761_s19 = smov (!%p158_p3), 110   ;;  %s1762_s20 = smov (!%p158_p3), 109   ;;  %v1518_v27 = vld [vmem:[%s1954_s1 + $0x4] sm:$0xf] (!%p158_p3)  ;;  %vm268_vm3 = vcmask (!%p158_p3), 31744  }
   0x9   : > { %v242_v4 = vunpack.c.0.s8 (!%p158_p3), %v241_v2  ;;  %s1763_s21 = smov (!%p158_p3), 108   ;;  %s1764_s22 = smov (!%p158_p3), 92   ;;  %vm502_vm4 = vcmask (!%p158_p3), 1031168   ;;  %vm631_vm5 = vcmask (!%p158_p3), 900096   ;;  %v234_v40 = vld [vmem:[%s1954_s1] sm:$0xf] (!%p158_p3) }
   0xa   : > { %s1765_s23 = smov (!%p158_p3), 91   ;;  %s1766_s24 = smov (!%p158_p3), 90   ;;  %vm760_vm6 = vcmask (!%p158_p3), 891904   ;;  %v1525_v51 = vld [vmem:[%s1954_s1 + $0x8] sm:$0xf] (!%p158_p3)  ;;  %vm889_vm7 = vcmask (!%p158_p3), 883712  }
   0xb   : > { %v245_v7 = vsub.s32 (!%p158_p3), %v242_v4, %v244_v3  ;;  %v1529_v61 = vld [vmem:[%s1954_s1 + $0xc] sm:$0xf] (!%p158_p3)  ;;  %vm1018_vm8 = vcmask (!%p158_p3), 752640   ;;  %vm1147_vm9 = vcmask (!%p158_p3), 744448   ;;  %vm1276_vm10 = vcmask (!%p158_p3), 736256  }
   0xe   : > { %s1961_s9 = smov (!%p200_p4, %s1745_s9), 1 }
   0xf   : > { %s1555_s13 = sshll.u32 %s1961_s9, 3 }
  0x10   : > { %s212_s16 = scalar_lea.vmem %s1953_s0, %s1555_s13 }
  0x11   : > { %v235_v8 = vld [vmem:[%s212_s16] sm:$0xff] }
  0x12   : > { %v246_v9 = vrot.slane %v235_v8, %v245_v7  ;;  %v239_v10 = vcombine.high %v235_v8, %v235_v8  ;;  %v233_v11 = vld [vmem:[%s212_s16] sm:$0x3f] }
  0x13   : > { %v1810_v12 = vrot.slane %v233_v11, %v245_v7  ;;  %v364_v13 = vcombine.high %v233_v11, %v233_v11 }
  0x14   : > { %256 = vrot.lane.b32.xlu0 %v246_v9, %s1759_s17  ;;  %v254_v14 = vcombine.high %v246_v9, %v246_v9  ;;  %v253_v15 = vrot.slane %v239_v10, %v245_v7 }
  0x15   : > { %v378_v16 = vrot.slane %v364_v13, %v245_v7  ;;  %v379_v21 = vcombine.high %v1810_v12, %v1810_v12  ;;  %v384_v29 = vsel %vm272_vm2, %v1810_v12, 0 }
  0x16   : > { %260 = vrot.lane.b32.xlu1 %v253_v15, %s1759_s17  ;;  %v255_v17 = vcombine.high %v253_v15, %v253_v15 }
  0x17   : > { %v390_v31 = vsel %vm272_vm2, %v378_v16, 0 }
  0x18   : > { %258 = vrot.lane.b32.xlu0 %v254_v14, %s1759_s17 }
  0x1a   : > { %262 = vrot.lane.b32.xlu1 %v255_v17, %s1759_s17 }
  0x1c   : > { %494 = vrot.lane.b32.xlu0 %v246_v9, %s1760_s18 }
  0x1e   : > { %496 = vrot.lane.b32.xlu1 %v254_v14, %s1760_s18 }
  0x20   : > { %498 = vrot.lane.b32.xlu0 %v253_v15, %s1760_s18 }
  0x22   : > { %500 = vrot.lane.b32.xlu1 %v255_v17, %s1760_s18 }
  0x24   : > { %623 = vrot.lane.b32.xlu0 %v246_v9, %s1761_s19 }
  0x26   : > { %625 = vrot.lane.b32.xlu1 %v254_v14, %s1761_s19 }
  0x28   : > { %627 = vrot.lane.b32.xlu0 %v253_v15, %s1761_s19 }
  0x2a   : > { %629 = vrot.lane.b32.xlu1 %v255_v17, %s1761_s19  ;;  %s1692_s19 = smul.u32 24, %s1961_s9 }
  0x2c   : > { %752 = vrot.lane.b32.xlu0 %v246_v9, %s1762_s20 }
  0x2e   : > { %754 = vrot.lane.b32.xlu1 %v254_v14, %s1762_s20 }
  0x30   : > { %756 = vrot.lane.b32.xlu0 %v253_v15, %s1762_s20 }
  0x32   : > { %758 = vrot.lane.b32.xlu1 %v255_v17, %s1762_s20 }
  0x34   : > { %881 = vrot.lane.b32.xlu0 %v246_v9, %s1763_s21 }
  0x36   : > { %883 = vrot.lane.b32.xlu1 %v254_v14, %s1763_s21 }
  0x38   : > { %885 = vrot.lane.b32.xlu0 %v253_v15, %s1763_s21 }
  0x3a   : > { %887 = vrot.lane.b32.xlu1 %v255_v17, %s1763_s21 }
  0x3c   : > { %1010 = vrot.lane.b32.xlu0 %v246_v9, %s1764_s22 }
  0x3e   : > { %1012 = vrot.lane.b32.xlu1 %v254_v14, %s1764_s22 }
  0x40   : > { %1014 = vrot.lane.b32.xlu0 %v253_v15, %s1764_s22 }
  0x42   : > { %1016 = vrot.lane.b32.xlu1 %v255_v17, %s1764_s22  ;;  %s230_s22 = scalar_lea.vmem %s1955_s2, %s1692_s19 }
  0x44   : > { %1139 = vrot.lane.b32.xlu0 %v246_v9, %s1765_s23 }
  0x46   : > { %1141 = vrot.lane.b32.xlu1 %v254_v14, %s1765_s23 }
  0x48   : > { %1143 = vrot.lane.b32.xlu0 %v253_v15, %s1765_s23 }
  0x4a   : > { %1145 = vrot.lane.b32.xlu1 %v255_v17, %s1765_s23 }
  0x4c   : > { %1268 = vrot.lane.b32.xlu0 %v246_v9, %s1766_s24  ;;  %v1533_v9 = vld [vmem:[%s1954_s1 + $0x10] sm:$0xf] }
  0x4e   : > { %1270 = vrot.lane.b32.xlu1 %v254_v14, %s1766_s24 }
  0x50   : > { %1272 = vrot.lane.b32.xlu0 %v253_v15, %s1766_s24 }
  0x52   : > { %1274 = vrot.lane.b32.xlu1 %v255_v17, %s1766_s24 }
  0x86   : > { %v257_v18 = vpop.permute.xlu0 %256 }
  0x88   : > { %v261_v19 = vpop.permute.xlu1 %260 }
  0x8a   : > { %v259_v20 = vpop.permute.xlu0 %258 }
  0x8b   : > { %v266_v22 = vsel %vm264_vm1, %v259_v20, %v261_v19  ;;  %v265_v23 = vsel %vm264_vm1, %v257_v18, %v259_v20 }
  0x8c   : > { %1519 = vmatprep.subr.msk.bf16.mxu0 %vm272_vm2, %v266_v22  ;;  %v263_v24 = vpop.permute.xlu1 %262  ;;  %v274_v25 = vsel %vm272_vm2, %v265_v23, 0 }
  0x8d   : > { %283 = vmatpush1.bf16.msra.mxu0 %v274_v25  ;;  %v267_v26 = vsel %vm264_vm1, %v261_v19, %v263_v24  ;;  %v1537_v19 = vld [vmem:[%s1954_s1 + $0x14] sm:$0xf] }
  0x8e   : > { %v280_v28 = vsel %vm272_vm2, %v267_v26, 0  ;;  %1522 = vmatprep.subr.msk.bf16.mxu0 %vm272_vm2, %v379_v21  ;;  %v495_v30 = vpop.permute.xlu0 %494 }
  0x8f   : > { %1575 = vmatpush3.bf16.msra.mxu1 %v280_v28 }
  0x90   : > { %1520 = vmatmul.mubr.msk.bf16.vlgmr.msra.gmra.mrb[0].mxu0 %vm268_vm3, %v1518_v27  ;;  %1580 = vmatprep.subr.bf16.mxu1 %v1756_v5  ;;  %v497_v32 = vpop.permute.xlu1 %496 }
  0x91   : > { %393 = vmatpush1.bf16.msra.mxu0 %v384_v29  ;;  %424 = vmatprep.mubr.bf16.mxu0 %v1757_v6  ;;  %v503_v37 = vsel %vm502_vm4, %v495_v30, %v497_v32  ;;  %v1541_v29 = vld [vmem:[%s1954_s1 + $0x18] sm:$0xf] }
  0x92   : > { %1577 = vmatmul.mubr.msk.bf16.vlgmr.msra.gmra.mrb[0].mxu1 %vm268_vm3, %v1518_v27  ;;  %v499_v33 = vpop.permute.xlu0 %498  ;;  %v510_v41 = vsel %vm272_vm2, %v503_v37, 0 }
  0x93   : > { %1581 = vmatpush3.bf16.msra.mxu1 %v390_v31  ;;  %v504_v34 = vsel %vm502_vm4, %v497_v32, %v499_v33  ;;  %1582 = vmatprep.mubr.msk.bf16.mxu1 %vm1758_vm0, %v1756_v5 }
  0x94   : > { %1526 = vmatprep.subr.msk.bf16.mxu0 %vm272_vm2, %v504_v34  ;;  %v501_v35 = vpop.permute.xlu1 %500  ;;  %1586 = vmatprep.subr.bf16.mxu1 %v1756_v5 }
  0x95   : > { %v505_v39 = vsel %vm502_vm4, %v499_v33, %v501_v35 }
  0x96   : > { %v624_v36 = vpop.permute.xlu0 %623  ;;  %v516_v44 = vsel %vm272_vm2, %v505_v39, 0  ;;  %v1549_v39 = vld [vmem:[%s1954_s1 + $0x20] sm:$0xf] }
  0x98   : > { %v626_v38 = vpop.permute.xlu1 %625 }
  0x99   : > { %v632_v47 = vsel %vm631_vm5, %v624_v36, %v626_v38  ;;  %v1545_v36 = vld [vmem:[%s1954_s1 + $0x1c] sm:$0xf] }
  0x9a   : > { %v628_v42 = vpop.permute.xlu0 %627  ;;  %v639_v52 = vsel %vm272_vm2, %v632_v47, 0 }
  0x9b   : > { %v633_v43 = vsel %vm631_vm5, %v626_v38, %v628_v42 }
  0x9c   : > { %1523 = vmatmul.mubr.msk.bf16.vlgmr.msra.gmra.mrb[0].mxu0 %vm268_vm3, %v234_v40  ;;  %v630_v46 = vpop.permute.xlu1 %629 }
  0x9d   : > { %519 = vmatpush1.bf16.msra.mxu0 %v510_v41  ;;  %550 = vmatprep.mubr.bf16.mxu0 %v1757_v6  ;;  %v634_v50 = vsel %vm631_vm5, %v628_v42, %v630_v46 }
  0x9e   : > { %1583 = vmatmul.mubr.msk.bf16.vlgmr.msra.gmra.mrb[0].mxu1 %vm268_vm3, %v234_v40  ;;  %1530 = vmatprep.subr.msk.bf16.mxu0 %vm272_vm2, %v633_v43  ;;  %v753_v45 = vpop.permute.xlu0 %752  ;;  %v645_v54 = vsel %vm272_vm2, %v634_v50, 0 }
  0x9f   : > { %1587 = vmatpush3.bf16.msra.mxu1 %v516_v44  ;;  %1588 = vmatprep.mubr.msk.bf16.mxu1 %vm1758_vm0, %v1756_v5 }
  0xa0   : > { %1592 = vmatprep.subr.bf16.mxu1 %v1756_v5  ;;  %v755_v49 = vpop.permute.xlu1 %754 }
  0xa1   : > { %v761_v57 = vsel %vm760_vm6, %v753_v45, %v755_v49 }
  0xa2   : > { %v757_v48 = vpop.permute.xlu0 %756  ;;  %v768_v62 = vsel %vm272_vm2, %v761_v57, 0 }
  0xa3   : > { %v762_v53 = vsel %vm760_vm6, %v755_v49, %v757_v48 }
  0xa4   : > { %v759_v56 = vpop.permute.xlu1 %758 }
  0xa5   : > { %v763_v60 = vsel %vm760_vm6, %v757_v48, %v759_v56 }
  0xa6   : > { %v882_v55 = vpop.permute.xlu0 %881  ;;  %v774_v0 = vsel %vm272_vm2, %v763_v60, 0 }
  0xa8   : > { %1527 = vmatmul.mubr.msk.bf16.vlgmr.msra.gmra.mrb[0].mxu0 %vm268_vm3, %v1525_v51  ;;  %v884_v59 = vpop.permute.xlu1 %883 }
  0xa9   : > { %648 = vmatpush1.bf16.msra.mxu0 %v639_v52  ;;  %679 = vmatprep.mubr.bf16.mxu0 %v1757_v6  ;;  %v890_v3 = vsel %vm889_vm7, %v882_v55, %v884_v59 }
  0xaa   : > { %1589 = vmatmul.mubr.msk.bf16.vlgmr.msra.gmra.mrb[0].mxu1 %vm268_vm3, %v1525_v51  ;;  %1534 = vmatprep.subr.msk.bf16.mxu0 %vm272_vm2, %v762_v53  ;;  %v886_v58 = vpop.permute.xlu0 %885  ;;  %v897_v10 = vsel %vm272_vm2, %v890_v3, 0 }
  0xab   : > { %1593 = vmatpush3.bf16.msra.mxu1 %v645_v54  ;;  %1594 = vmatprep.mubr.msk.bf16.mxu1 %vm1758_vm0, %v1756_v5  ;;  %v891_v63 = vsel %vm889_vm7, %v884_v59, %v886_v58 }
  0xac   : > { %1598 = vmatprep.subr.bf16.mxu1 %v1756_v5  ;;  %v888_v2 = vpop.permute.xlu1 %887 }
  0xad   : > { %v892_v8 = vsel %vm889_vm7, %v886_v58, %v888_v2 }
  0xae   : > { %v1011_v1 = vpop.permute.xlu0 %1010  ;;  %v903_v12 = vsel %vm272_vm2, %v892_v8, 0 }
  0xb0   : > { %v1013_v7 = vpop.permute.xlu1 %1012 }
  0xb1   : > { %v1019_v15 = vsel %vm1018_vm8, %v1011_v1, %v1013_v7 }
  0xb2   : > { %v1015_v4 = vpop.permute.xlu0 %1014  ;;  %v1026_v20 = vsel %vm272_vm2, %v1019_v15, 0 }
  0xb3   : > { %v1020_v11 = vsel %vm1018_vm8, %v1013_v7, %v1015_v4 }
  0xb4   : > { %1531 = vmatmul.mubr.msk.bf16.vlgmr.msra.gmra.mrb[0].mxu0 %vm268_vm3, %v1529_v61  ;;  %v1017_v14 = vpop.permute.xlu1 %1016 }
  0xb5   : > { %777 = vmatpush1.bf16.msra.mxu0 %v768_v62  ;;  %808 = vmatprep.mubr.bf16.mxu0 %v1757_v6  ;;  %v1021_v18 = vsel %vm1018_vm8, %v1015_v4, %v1017_v14 }
  0xb6   : > { %1595 = vmatmul.mubr.msk.bf16.vlgmr.msra.gmra.mrb[0].mxu1 %vm268_vm3, %v1529_v61  ;;  %1538 = vmatprep.subr.msk.bf16.mxu0 %vm272_vm2, %v891_v63  ;;  %v1140_v13 = vpop.permute.xlu0 %1139  ;;  %v1032_v22 = vsel %vm272_vm2, %v1021_v18, 0 }
  0xb7   : > { %1599 = vmatpush3.bf16.msra.mxu1 %v774_v0  ;;  %1600 = vmatprep.mubr.msk.bf16.mxu1 %vm1758_vm0, %v1756_v5 }
  0xb8   : > { %1604 = vmatprep.subr.bf16.mxu1 %v1756_v5  ;;  %v1142_v17 = vpop.permute.xlu1 %1141 }
  0xb9   : > { %v1148_v25 = vsel %vm1147_vm9, %v1140_v13, %v1142_v17 }
  0xba   : > { %v1144_v16 = vpop.permute.xlu0 %1143  ;;  %v1155_v30 = vsel %vm272_vm2, %v1148_v25, 0 }
  0xbb   : > { %v1149_v21 = vsel %vm1147_vm9, %v1142_v17, %v1144_v16 }
  0xbc   : > { %v1146_v24 = vpop.permute.xlu1 %1145 }
  0xbd   : > { %v1150_v28 = vsel %vm1147_vm9, %v1144_v16, %v1146_v24 }
  0xbe   : > { %v1269_v23 = vpop.permute.xlu0 %1268  ;;  %v1161_v32 = vsel %vm272_vm2, %v1150_v28, 0 }
  0xc0   : > { %1535 = vmatmul.mubr.msk.bf16.vlgmr.msra.gmra.mrb[0].mxu0 %vm268_vm3, %v1533_v9  ;;  %v1271_v27 = vpop.permute.xlu1 %1270 }
  0xc1   : > { %906 = vmatpush1.bf16.msra.mxu0 %v897_v10  ;;  %937 = vmatprep.mubr.bf16.mxu0 %v1757_v6  ;;  %v1277_v34 = vsel %vm1276_vm10, %v1269_v23, %v1271_v27 }
  0xc2   : > { %1601 = vmatmul.mubr.msk.bf16.vlgmr.msra.gmra.mrb[0].mxu1 %vm268_vm3, %v1533_v9  ;;  %1542 = vmatprep.subr.msk.bf16.mxu0 %vm272_vm2, %v1020_v11  ;;  %v1273_v26 = vpop.permute.xlu0 %1272  ;;  %v1284_v37 = vsel %vm272_vm2, %v1277_v34, 0 }
  0xc3   : > { %1605 = vmatpush3.bf16.msra.mxu1 %v903_v12  ;;  %1606 = vmatprep.mubr.msk.bf16.mxu1 %vm1758_vm0, %v1756_v5  ;;  %v1278_v31 = vsel %vm1276_vm10, %v1271_v27, %v1273_v26 }
  0xc4   : > { %1610 = vmatprep.subr.bf16.mxu1 %v1756_v5  ;;  %v1275_v33 = vpop.permute.xlu1 %1274 }
  0xc5   : > { %v1279_v35 = vsel %vm1276_vm10, %v1273_v26, %v1275_v33 }
  0xc6   : > { %v1290_v38 = vsel %vm272_vm2, %v1279_v35, 0 }
  0xcc   : > { %1539 = vmatmul.mubr.msk.bf16.vlgmr.msra.gmra.mrb[0].mxu0 %vm268_vm3, %v1537_v19 }
  0xcd   : > { %1035 = vmatpush1.bf16.msra.mxu0 %v1026_v20  ;;  %1066 = vmatprep.mubr.bf16.mxu0 %v1757_v6 }
  0xce   : > { %1607 = vmatmul.mubr.msk.bf16.vlgmr.msra.gmra.mrb[0].mxu1 %vm268_vm3, %v1537_v19  ;;  %1546 = vmatprep.subr.msk.bf16.mxu0 %vm272_vm2, %v1149_v21 }
  0xcf   : > { %1611 = vmatpush3.bf16.msra.mxu1 %v1032_v22  ;;  %1612 = vmatprep.mubr.msk.bf16.mxu1 %vm1758_vm0, %v1756_v5 }
  0xd0   : > { %1616 = vmatprep.subr.bf16.mxu1 %v1756_v5 }
  0xd8   : > { %1543 = vmatmul.mubr.msk.bf16.vlgmr.msra.gmra.mrb[0].mxu0 %vm268_vm3, %v1541_v29 }
  0xd9   : > { %1164 = vmatpush1.bf16.msra.mxu0 %v1155_v30  ;;  %1195 = vmatprep.mubr.bf16.mxu0 %v1757_v6 }
  0xda   : > { %1613 = vmatmul.mubr.msk.bf16.vlgmr.msra.gmra.mrb[0].mxu1 %vm268_vm3, %v1541_v29  ;;  %1550 = vmatprep.subr.msk.bf16.mxu0 %vm272_vm2, %v1278_v31 }
  0xdb   : > { %1617 = vmatpush3.bf16.msra.mxu1 %v1161_v32  ;;  %1618 = vmatprep.mubr.msk.bf16.mxu1 %vm1758_vm0, %v1756_v5 }
  0xdc   : > { %1622 = vmatprep.subr.bf16.mxu1 %v1756_v5 }
  0xe4   : > { %1547 = vmatmul.mubr.msk.bf16.vlgmr.msra.gmra.mrb[0].mxu0 %vm268_vm3, %v1545_v36 }
  0xe5   : > { %1293 = vmatpush1.bf16.msra.mxu0 %v1284_v37  ;;  %1324 = vmatprep.mubr.bf16.mxu0 %v1757_v6 }
  0xe6   : > { %1619 = vmatmul.mubr.msk.bf16.vlgmr.msra.gmra.mrb[0].mxu1 %vm268_vm3, %v1545_v36 }
  0xe7   : > { %1623 = vmatpush3.bf16.msra.mxu1 %v1290_v38  ;;  %1624 = vmatprep.mubr.msk.bf16.mxu1 %vm1758_vm0, %v1756_v5 }
  0xf0   : > { %1551 = vmatmul.mubr.msk.bf16.vlgmr.msra.gmra.mrb[0].mxu0 %vm268_vm3, %v1549_v39 }
  0xf2   : > { %1625 = vmatmul.mubr.msk.bf16.vlgmr.msra.gmra.mrb[0].mxu1 %vm268_vm3, %v1549_v39 }
 0x1c3   : > { %v1326_v6 = vpop.f32.mrb[0].mxu0 }
 0x1c4   : > { %1376 = vst [vmem:[%s230_s22] sm:$0xff] %v1326_v6  ;;  %v1328_v40 = vpop.f32.mrb[1].mxu0 }
 0x1c5   : > { %1377 = vst [vmem:[%s230_s22 + $0x8] sm:$0xff] %v1328_v40  ;;  %v1330_v41 = vpop.f32.mrb[2].mxu0  ;;  %v1367_v42 = vpop.f32.mrb[0].mxu1 }
 0x1c6   : > { %1378 = vst [vmem:[%s230_s22 + $0x10] sm:$0xff] %v1367_v42  ;;  %v1331_v5 = vpop.f32.mrb[3].mxu0  ;;  %v1626_v43 = vpop.f32.mrb[1].mxu1 }
 0x1c7   : > { %v1370_v44 = vpop.f32.mrb[2].mxu1 }
 0x1c8   : > { %v1627_v45 = vpop.f32.mrb[3].mxu1 }
 0x1c9 PF: > { %s12_s11 = sadd.s32 1, %s1753_s11   ;;  %s1956_s9 = smov %s1749_s10 }
 0x1ca   : > { %p9_p5 = scmp.ge.s32.totalorder %s12_s11, 4   ;;  %s1957_s10 = smov %s1959_s12 }
 0x1cc   :  { %11 = sbr.rel (!%p9_p5) target bundleno = 2 (0x2), region = 69 }

</bundles_post_ra>
